<compile_context>
chip_gen: v6e
topology: v6e:2x2x1
jax: 0.10.0
libtpu: 0.0.40
codegen_flags: <defaults>
</compile_context>

<pallas_src>
import jax
import jax.numpy as jnp
import numpy as np
from jax.experimental import pallas as pl


# --------------------------- Fused forward kernel ----------------------------
def _make_fused_kernel(num_layers, T, B, H):
    """Fused kernel for fixed (num_layers, T, B, H).

    Ref order (all VMEM, full-array blocks):
      x2d      : (T*B, I)    time-major flattened input (row t*B + b)
      w_ih0_t  : (I, H)      layer-0 input->hidden, pre-transposed
      b0       : (1, H)      layer-0 bias (b_ih0 + b_hh0)
      w_blk    : (L*H, L*H)  block upper-bidiagonal recurrent weights
      b_blk    : (1, L*H)    packed biases (layer-0 block is zero)
      fc_w_t   : (H, C)      classifier weight, pre-transposed
      fc_b     : (1, C)
      out      : (B, C)
    """
    L = num_layers

    def kernel(x_ref, wih0_ref, b0_ref, wblk_ref, bblk_ref,
               fcw_ref, fcb_ref, out_ref):
        # Hoisted layer-0 input projection: one MXU matmul for all T timesteps,
        # kept as a value in vregs (no VMEM scratch, no masked stores).
        x_proj = (
            jnp.dot(x_ref[...], wih0_ref[...], preferred_element_type=jnp.float32)
            + b0_ref[...]
        )  # (T*B, H)
        # Static per-timestep slices; independent of the recurrence, so the
        # scheduler keeps them off the serial critical chain.
        x_proj_t = [x_proj[t * B:(t + 1) * B, :] for t in range(T)]

        w_blk = wblk_ref[...]   # (L*H, L*H)
        b_blk = bblk_ref[...]   # (1, L*H)

        # Layer wavefront: at diagonal step s, layer l computes timestep
        # t = s - l from h_cat = [h_0[s-1], h_1[s-2], ...] with ONE packed
        # matmul.  T is tiny & static -> fully unrolled at trace time.
        h_parts = [jnp.zeros((B, H), jnp.float32) for _ in range(L)]
        for s in range(T + L - 1):
            if s == 0:
                # h_cat is all zeros: the recurrent matmul would be wasted.
                h_parts[0] = jnp.maximum(x_proj_t[0], 0.0)
                continue
            h_cat = h_parts[0] if L == 1 else jnp.concatenate(h_parts, axis=1)
            pre = (
                jnp.dot(h_cat, w_blk, preferred_element_type=jnp.float32)
                + b_blk
            )  # (B, L*H)
            for l in range(L):
                t = s - l
                if not (0 <= t < T):
                    continue          # boundary of the wavefront: nothing to do
                contrib = pre[:, l * H:(l + 1) * H]
                if l == 0:
                    contrib = contrib + x_proj_t[t]   # bias already folded in
                h_parts[l] = jnp.maximum(contrib, 0.0)  # relu nonlinearity

        # Final Linear on the top layer's last timestep (fused, no extra
        # kernel launch or HBM round trip of the (B, H) hidden state).
        out_ref[...] = (
            jnp.dot(h_parts[L - 1], fcw_ref[...], preferred_element_type=jnp.float32)
            + fcb_ref[...]
        ).astype(out_ref.dtype)

    return kernel


def rnn_ids_forward(x_btf, params):
    """Matches RNN_IDS.forward.  x_btf: (B, T, input_size), batch_first."""
    B, T, I = x_btf.shape
    L = params["num_layers"]
    H = params["b0"].shape[1]
    C = params["fc_w_t"].shape[1]

    # Time-major flatten for the hoisted layer-0 projection (row t*B + b).
    # Negligible at this scale; fuse into the kernel only once B*T*I is large.
    x2d = jnp.transpose(x_btf, (1, 0, 2)).reshape(T * B, I)

    inputs = [x2d, params["w_ih0_t"], params["b0"], params["w_blk"],
              params["b_blk"], params["fc_w_t"], params["fc_b"]]
    in_specs = [pl.BlockSpec(a.shape, lambda: (0, 0)) for a in inputs]

    return pl.pallas_call(
        _make_fused_kernel(L, T, B, H),
        out_shape=jax.ShapeDtypeStruct((B, C), jnp.float32),
        in_specs=in_specs,
        out_specs=pl.BlockSpec((B, C), lambda: (0, 0)),
    )(*inputs)


# --------------------------- Parameter construction --------------------------
def make_params(key, input_size, hidden_size, num_layers, num_classes):
    """Deterministic init mimicking PyTorch's U(-1/sqrt(H), 1/sqrt(H)), plus
    the host-side block packing used by the fused kernel."""
    H, L = hidden_size, num_layers
    bound = 1.0 / np.sqrt(H)

    raw_layers = []
    for layer in range(L):
        in_sz = input_size if layer == 0 else H
        key, k1, k2, k3, k4 = jax.random.split(key, 5)
        w_ih = jax.random.uniform(k1, (H, in_sz), jnp.float32, -bound, bound)
        w_hh = jax.random.uniform(k2, (H, H), jnp.float32, -bound, bound)
        b_ih = jax.random.uniform(k3, (H,), jnp.float32, -bound, bound)
        b_hh = jax.random.uniform(k4, (H,), jnp.float32, -bound, bound)
        raw_layers.append((w_ih, w_hh, b_ih, b_hh))
    key, k5, k6 = jax.random.split(key, 3)
    fc_w = jax.random.uniform(k5, (num_classes, H), jnp.float32, -bound, bound)
    fc_b = jax.random.uniform(k6, (num_classes,), jnp.float32, -bound, bound)

    # Block-packed recurrent weight / bias for the layer wavefront.
    #   block (l, l)   = W_hh_l^T      (h_l[t-1] contribution)
    #   block (l-1, l) = W_ih_l^T      (h_{l-1}[t] contribution, l >= 1)
    w_blk = np.zeros((L * H, L * H), np.float32)
    b_blk = np.zeros((1, L * H), np.float32)
    for l, (w_ih, w_hh, b_ih, b_hh) in enumerate(raw_layers):
        w_blk[l * H:(l + 1) * H, l * H:(l + 1) * H] = np.asarray(w_hh).T
        if l >= 1:
            w_blk[(l - 1) * H:l * H, l * H:(l + 1) * H] = np.asarray(w_ih).T
            b_blk[0, l * H:(l + 1) * H] = np.asarray(b_ih + b_hh)

    w_ih0, _, b_ih0, b_hh0 = raw_layers[0]
    return {
        "num_layers": L,
        # per-layer form for the pure-JAX reference
        "rnn_layers": [(w_ih.T, w_hh.T, (b_ih + b_hh)[None, :])
                       for (w_ih, w_hh, b_ih, b_hh) in raw_layers],
        # fused-kernel packing
        "w_ih0_t": w_ih0.T,                 # (I, H)
        "b0": (b_ih0 + b_hh0)[None, :],     # (1, H)
        "w_blk": jnp.asarray(w_blk),        # (L*H, L*H)
        "b_blk": jnp.asarray(b_blk),        # (1, L*H)
        "fc_w_t": fc_w.T,                   # (H, C)
        "fc_b": fc_b[None, :],              # (1, C)
    }


# ------------------------------ Pure-JAX reference ---------------------------
def rnn_ids_reference(x_btf, params):
    B = x_btf.shape[0]
    x = jnp.transpose(x_btf, (1, 0, 2))  # (T, B, F)
    for (w_ih_t, w_hh_t, bias) in params["rnn_layers"]:
        H = w_hh_t.shape[0]
        h = jnp.zeros((B, H), jnp.float32)
        outs = []
        for t in range(x.shape[0]):
            h = jax.nn.relu(x[t] @ w_ih_t + h @ w_hh_t + bias)
            outs.append(h)
        x = jnp.stack(outs, axis=0)
    return x[-1] @ params["fc_w_t"] + params["fc_b"]


if __name__ == "__main__":
    # Small shapes consistent with the module's forward.
    batch, seq_len = 2, 8
    input_size, hidden_size, num_layers, num_classes = 16, 32, 2, 5

    key = jax.random.PRNGKey(0)
    key, kx = jax.random.split(key)
    x = jax.random.normal(kx, (batch, seq_len, input_size), jnp.float32)
    params = make_params(key, input_size, hidden_size, num_layers, num_classes)

    out = jax.block_until_ready(rnn_ids_forward(x, params))

    ref = rnn_ids_reference(x, params)
    np.testing.assert_allclose(np.asarray(out), np.asarray(ref), rtol=1e-5, atol=1e-5)

    print("KERNEL_OK")
</pallas_src>

<mosaic_0001>
module attributes {stable_mosaic.version = 11 : i64} {
  func.func @kernel(%arg0: memref<16x16xf32, #tpu.memory_space<vmem>>, %arg1: memref<16x32xf32, #tpu.memory_space<vmem>>, %arg2: memref<1x32xf32, #tpu.memory_space<vmem>>, %arg3: memref<64x64xf32, #tpu.memory_space<vmem>>, %arg4: memref<1x64xf32, #tpu.memory_space<vmem>>, %arg5: memref<32x5xf32, #tpu.memory_space<vmem>>, %arg6: memref<1x5xf32, #tpu.memory_space<vmem>>, %arg7: memref<2x5xf32, #tpu.memory_space<vmem>>) attributes {dimension_semantics = [], scalar_prefetch = 0 : i64, scratch_operands = 0 : i64, tpu.core_type = #tpu.core_type<tc>} {
    %c0 = arith.constant 0 : index
    %c0_0 = arith.constant 0 : index
    %0 = vector.load %arg0[%c0, %c0_0] : memref<16x16xf32, #tpu.memory_space<vmem>>, vector<16x16xf32>
    %c0_1 = arith.constant 0 : index
    %c0_2 = arith.constant 0 : index
    %1 = vector.load %arg1[%c0_1, %c0_2] : memref<16x32xf32, #tpu.memory_space<vmem>>, vector<16x32xf32>
    %cst = arith.constant dense<0.000000e+00> : vector<16x32xf32>
    %2 = tpu.matmul %0, %1, %cst {dimension_numbers = #tpu.dot_dimension_numbers<[1], [0], [0], [1], [0, 0, 1, 1], [], []>} : vector<16x16xf32>, vector<16x32xf32>, vector<16x32xf32> -> vector<16x32xf32>
    %c0_3 = arith.constant 0 : index
    %c0_4 = arith.constant 0 : index
    %3 = vector.load %arg2[%c0_3, %c0_4] : memref<1x32xf32, #tpu.memory_space<vmem>>, vector<1x32xf32>
    %4 = vector.broadcast %3 : vector<1x32xf32> to vector<16x32xf32>
    %5 = arith.addf %2, %4 : vector<16x32xf32>
    %6 = vector.extract_strided_slice %5 {offsets = [0, 0], sizes = [2, 32], strides = [1, 1]} : vector<16x32xf32> to vector<2x32xf32>
    %7 = vector.extract_strided_slice %5 {offsets = [2, 0], sizes = [2, 32], strides = [1, 1]} : vector<16x32xf32> to vector<2x32xf32>
    %8 = vector.extract_strided_slice %5 {offsets = [4, 0], sizes = [2, 32], strides = [1, 1]} : vector<16x32xf32> to vector<2x32xf32>
    %9 = vector.extract_strided_slice %5 {offsets = [6, 0], sizes = [2, 32], strides = [1, 1]} : vector<16x32xf32> to vector<2x32xf32>
    %10 = vector.extract_strided_slice %5 {offsets = [8, 0], sizes = [2, 32], strides = [1, 1]} : vector<16x32xf32> to vector<2x32xf32>
    %11 = vector.extract_strided_slice %5 {offsets = [10, 0], sizes = [2, 32], strides = [1, 1]} : vector<16x32xf32> to vector<2x32xf32>
    %12 = vector.extract_strided_slice %5 {offsets = [12, 0], sizes = [2, 32], strides = [1, 1]} : vector<16x32xf32> to vector<2x32xf32>
    %13 = vector.extract_strided_slice %5 {offsets = [14, 0], sizes = [2, 32], strides = [1, 1]} : vector<16x32xf32> to vector<2x32xf32>
    %c0_5 = arith.constant 0 : index
    %c0_6 = arith.constant 0 : index
    %14 = vector.load %arg3[%c0_5, %c0_6] : memref<64x64xf32, #tpu.memory_space<vmem>>, vector<64x64xf32>
    %c0_7 = arith.constant 0 : index
    %c0_8 = arith.constant 0 : index
    %15 = vector.load %arg4[%c0_7, %c0_8] : memref<1x64xf32, #tpu.memory_space<vmem>>, vector<1x64xf32>
    %cst_9 = arith.constant 0.000000e+00 : f32
    %16 = vector.broadcast %cst_9 : f32 to vector<2x32xf32>
    %cst_10 = arith.constant 0.000000e+00 : f32
    %17 = vector.broadcast %cst_10 : f32 to vector<2x32xf32>
    %18 = arith.maximumf %6, %17 : vector<2x32xf32>
    %19 = tpu.concatenate %18, %16 in 1 : vector<2x32xf32>, vector<2x32xf32> -> vector<2x64xf32>
    %cst_11 = arith.constant dense<0.000000e+00> : vector<2x64xf32>
    %20 = tpu.matmul %19, %14, %cst_11 {dimension_numbers = #tpu.dot_dimension_numbers<[1], [0], [0], [1], [0, 0, 1, 1], [], []>} : vector<2x64xf32>, vector<64x64xf32>, vector<2x64xf32> -> vector<2x64xf32>
    %21 = vector.broadcast %15 : vector<1x64xf32> to vector<2x64xf32>
    %22 = arith.addf %20, %21 : vector<2x64xf32>
    %23 = vector.extract_strided_slice %22 {offsets = [0, 0], sizes = [2, 32], strides = [1, 1]} : vector<2x64xf32> to vector<2x32xf32>
    %24 = arith.addf %23, %7 : vector<2x32xf32>
    %cst_12 = arith.constant 0.000000e+00 : f32
    %25 = vector.broadcast %cst_12 : f32 to vector<2x32xf32>
    %26 = arith.maximumf %24, %25 : vector<2x32xf32>
    %27 = vector.extract_strided_slice %22 {offsets = [0, 32], sizes = [2, 32], strides = [1, 1]} : vector<2x64xf32> to vector<2x32xf32>
    %cst_13 = arith.constant 0.000000e+00 : f32
    %28 = vector.broadcast %cst_13 : f32 to vector<2x32xf32>
    %29 = arith.maximumf %27, %28 : vector<2x32xf32>
    %30 = tpu.concatenate %26, %29 in 1 : vector<2x32xf32>, vector<2x32xf32> -> vector<2x64xf32>
    %cst_14 = arith.constant dense<0.000000e+00> : vector<2x64xf32>
    %31 = tpu.matmul %30, %14, %cst_14 {dimension_numbers = #tpu.dot_dimension_numbers<[1], [0], [0], [1], [0, 0, 1, 1], [], []>} : vector<2x64xf32>, vector<64x64xf32>, vector<2x64xf32> -> vector<2x64xf32>
    %32 = vector.broadcast %15 : vector<1x64xf32> to vector<2x64xf32>
    %33 = arith.addf %31, %32 : vector<2x64xf32>
    %34 = vector.extract_strided_slice %33 {offsets = [0, 0], sizes = [2, 32], strides = [1, 1]} : vector<2x64xf32> to vector<2x32xf32>
    %35 = arith.addf %34, %8 : vector<2x32xf32>
    %cst_15 = arith.constant 0.000000e+00 : f32
    %36 = vector.broadcast %cst_15 : f32 to vector<2x32xf32>
    %37 = arith.maximumf %35, %36 : vector<2x32xf32>
    %38 = vector.extract_strided_slice %33 {offsets = [0, 32], sizes = [2, 32], strides = [1, 1]} : vector<2x64xf32> to vector<2x32xf32>
    %cst_16 = arith.constant 0.000000e+00 : f32
    %39 = vector.broadcast %cst_16 : f32 to vector<2x32xf32>
    %40 = arith.maximumf %38, %39 : vector<2x32xf32>
    %41 = tpu.concatenate %37, %40 in 1 : vector<2x32xf32>, vector<2x32xf32> -> vector<2x64xf32>
    %cst_17 = arith.constant dense<0.000000e+00> : vector<2x64xf32>
    %42 = tpu.matmul %41, %14, %cst_17 {dimension_numbers = #tpu.dot_dimension_numbers<[1], [0], [0], [1], [0, 0, 1, 1], [], []>} : vector<2x64xf32>, vector<64x64xf32>, vector<2x64xf32> -> vector<2x64xf32>
    %43 = vector.broadcast %15 : vector<1x64xf32> to vector<2x64xf32>
    %44 = arith.addf %42, %43 : vector<2x64xf32>
    %45 = vector.extract_strided_slice %44 {offsets = [0, 0], sizes = [2, 32], strides = [1, 1]} : vector<2x64xf32> to vector<2x32xf32>
    %46 = arith.addf %45, %9 : vector<2x32xf32>
    %cst_18 = arith.constant 0.000000e+00 : f32
    %47 = vector.broadcast %cst_18 : f32 to vector<2x32xf32>
    %48 = arith.maximumf %46, %47 : vector<2x32xf32>
    %49 = vector.extract_strided_slice %44 {offsets = [0, 32], sizes = [2, 32], strides = [1, 1]} : vector<2x64xf32> to vector<2x32xf32>
    %cst_19 = arith.constant 0.000000e+00 : f32
    %50 = vector.broadcast %cst_19 : f32 to vector<2x32xf32>
    %51 = arith.maximumf %49, %50 : vector<2x32xf32>
    %52 = tpu.concatenate %48, %51 in 1 : vector<2x32xf32>, vector<2x32xf32> -> vector<2x64xf32>
    %cst_20 = arith.constant dense<0.000000e+00> : vector<2x64xf32>
    %53 = tpu.matmul %52, %14, %cst_20 {dimension_numbers = #tpu.dot_dimension_numbers<[1], [0], [0], [1], [0, 0, 1, 1], [], []>} : vector<2x64xf32>, vector<64x64xf32>, vector<2x64xf32> -> vector<2x64xf32>
    %54 = vector.broadcast %15 : vector<1x64xf32> to vector<2x64xf32>
    %55 = arith.addf %53, %54 : vector<2x64xf32>
    %56 = vector.extract_strided_slice %55 {offsets = [0, 0], sizes = [2, 32], strides = [1, 1]} : vector<2x64xf32> to vector<2x32xf32>
    %57 = arith.addf %56, %10 : vector<2x32xf32>
    %cst_21 = arith.constant 0.000000e+00 : f32
    %58 = vector.broadcast %cst_21 : f32 to vector<2x32xf32>
    %59 = arith.maximumf %57, %58 : vector<2x32xf32>
    %60 = vector.extract_strided_slice %55 {offsets = [0, 32], sizes = [2, 32], strides = [1, 1]} : vector<2x64xf32> to vector<2x32xf32>
    %cst_22 = arith.constant 0.000000e+00 : f32
    %61 = vector.broadcast %cst_22 : f32 to vector<2x32xf32>
    %62 = arith.maximumf %60, %61 : vector<2x32xf32>
    %63 = tpu.concatenate %59, %62 in 1 : vector<2x32xf32>, vector<2x32xf32> -> vector<2x64xf32>
    %cst_23 = arith.constant dense<0.000000e+00> : vector<2x64xf32>
    %64 = tpu.matmul %63, %14, %cst_23 {dimension_numbers = #tpu.dot_dimension_numbers<[1], [0], [0], [1], [0, 0, 1, 1], [], []>} : vector<2x64xf32>, vector<64x64xf32>, vector<2x64xf32> -> vector<2x64xf32>
    %65 = vector.broadcast %15 : vector<1x64xf32> to vector<2x64xf32>
    %66 = arith.addf %64, %65 : vector<2x64xf32>
    %67 = vector.extract_strided_slice %66 {offsets = [0, 0], sizes = [2, 32], strides = [1, 1]} : vector<2x64xf32> to vector<2x32xf32>
    %68 = arith.addf %67, %11 : vector<2x32xf32>
    %cst_24 = arith.constant 0.000000e+00 : f32
    %69 = vector.broadcast %cst_24 : f32 to vector<2x32xf32>
    %70 = arith.maximumf %68, %69 : vector<2x32xf32>
    %71 = vector.extract_strided_slice %66 {offsets = [0, 32], sizes = [2, 32], strides = [1, 1]} : vector<2x64xf32> to vector<2x32xf32>
    %cst_25 = arith.constant 0.000000e+00 : f32
    %72 = vector.broadcast %cst_25 : f32 to vector<2x32xf32>
    %73 = arith.maximumf %71, %72 : vector<2x32xf32>
    %74 = tpu.concatenate %70, %73 in 1 : vector<2x32xf32>, vector<2x32xf32> -> vector<2x64xf32>
    %cst_26 = arith.constant dense<0.000000e+00> : vector<2x64xf32>
    %75 = tpu.matmul %74, %14, %cst_26 {dimension_numbers = #tpu.dot_dimension_numbers<[1], [0], [0], [1], [0, 0, 1, 1], [], []>} : vector<2x64xf32>, vector<64x64xf32>, vector<2x64xf32> -> vector<2x64xf32>
    %76 = vector.broadcast %15 : vector<1x64xf32> to vector<2x64xf32>
    %77 = arith.addf %75, %76 : vector<2x64xf32>
    %78 = vector.extract_strided_slice %77 {offsets = [0, 0], sizes = [2, 32], strides = [1, 1]} : vector<2x64xf32> to vector<2x32xf32>
    %79 = arith.addf %78, %12 : vector<2x32xf32>
    %cst_27 = arith.constant 0.000000e+00 : f32
    %80 = vector.broadcast %cst_27 : f32 to vector<2x32xf32>
    %81 = arith.maximumf %79, %80 : vector<2x32xf32>
    %82 = vector.extract_strided_slice %77 {offsets = [0, 32], sizes = [2, 32], strides = [1, 1]} : vector<2x64xf32> to vector<2x32xf32>
    %cst_28 = arith.constant 0.000000e+00 : f32
    %83 = vector.broadcast %cst_28 : f32 to vector<2x32xf32>
    %84 = arith.maximumf %82, %83 : vector<2x32xf32>
    %85 = tpu.concatenate %81, %84 in 1 : vector<2x32xf32>, vector<2x32xf32> -> vector<2x64xf32>
    %cst_29 = arith.constant dense<0.000000e+00> : vector<2x64xf32>
    %86 = tpu.matmul %85, %14, %cst_29 {dimension_numbers = #tpu.dot_dimension_numbers<[1], [0], [0], [1], [0, 0, 1, 1], [], []>} : vector<2x64xf32>, vector<64x64xf32>, vector<2x64xf32> -> vector<2x64xf32>
    %87 = vector.broadcast %15 : vector<1x64xf32> to vector<2x64xf32>
    %88 = arith.addf %86, %87 : vector<2x64xf32>
    %89 = vector.extract_strided_slice %88 {offsets = [0, 0], sizes = [2, 32], strides = [1, 1]} : vector<2x64xf32> to vector<2x32xf32>
    %90 = arith.addf %89, %13 : vector<2x32xf32>
    %cst_30 = arith.constant 0.000000e+00 : f32
    %91 = vector.broadcast %cst_30 : f32 to vector<2x32xf32>
    %92 = arith.maximumf %90, %91 : vector<2x32xf32>
    %93 = vector.extract_strided_slice %88 {offsets = [0, 32], sizes = [2, 32], strides = [1, 1]} : vector<2x64xf32> to vector<2x32xf32>
    %cst_31 = arith.constant 0.000000e+00 : f32
    %94 = vector.broadcast %cst_31 : f32 to vector<2x32xf32>
    %95 = arith.maximumf %93, %94 : vector<2x32xf32>
    %96 = tpu.concatenate %92, %95 in 1 : vector<2x32xf32>, vector<2x32xf32> -> vector<2x64xf32>
    %cst_32 = arith.constant dense<0.000000e+00> : vector<2x64xf32>
    %97 = tpu.matmul %96, %14, %cst_32 {dimension_numbers = #tpu.dot_dimension_numbers<[1], [0], [0], [1], [0, 0, 1, 1], [], []>} : vector<2x64xf32>, vector<64x64xf32>, vector<2x64xf32> -> vector<2x64xf32>
    %98 = vector.broadcast %15 : vector<1x64xf32> to vector<2x64xf32>
    %99 = arith.addf %97, %98 : vector<2x64xf32>
    %100 = vector.extract_strided_slice %99 {offsets = [0, 32], sizes = [2, 32], strides = [1, 1]} : vector<2x64xf32> to vector<2x32xf32>
    %cst_33 = arith.constant 0.000000e+00 : f32
    %101 = vector.broadcast %cst_33 : f32 to vector<2x32xf32>
    %102 = arith.maximumf %100, %101 : vector<2x32xf32>
    %c0_34 = arith.constant 0 : index
    %c0_35 = arith.constant 0 : index
    %103 = vector.load %arg5[%c0_34, %c0_35] : memref<32x5xf32, #tpu.memory_space<vmem>>, vector<32x5xf32>
    %cst_36 = arith.constant dense<0.000000e+00> : vector<2x5xf32>
    %104 = tpu.matmul %102, %103, %cst_36 {dimension_numbers = #tpu.dot_dimension_numbers<[1], [0], [0], [1], [0, 0, 1, 1], [], []>} : vector<2x32xf32>, vector<32x5xf32>, vector<2x5xf32> -> vector<2x5xf32>
    %c0_37 = arith.constant 0 : index
    %c0_38 = arith.constant 0 : index
    %105 = vector.load %arg6[%c0_37, %c0_38] : memref<1x5xf32, #tpu.memory_space<vmem>>, vector<1x5xf32>
    %106 = vector.broadcast %105 : vector<1x5xf32> to vector<2x5xf32>
    %107 = arith.addf %104, %106 : vector<2x5xf32>
    %c0_39 = arith.constant 0 : index
    %c0_40 = arith.constant 0 : index
    %108 = vector.load %arg7[%c0_39, %c0_40] : memref<2x5xf32, #tpu.memory_space<vmem>>, vector<2x5xf32>
    tpu.vector_store %arg7[%c0_39, %c0_40], %107 {strides = array<i32>} : memref<2x5xf32, #tpu.memory_space<vmem>>, vector<2x5xf32>,
    return
  }
}

</mosaic_0001>

<bundles_post_ra>
// kernel: tpu_custom_call.1
= control target key start
LH: loop header
LB: loop body
LE: loop exit
PB: predicated region body
PF: predicated region fallthrough
CT: control target
= control target key end

     0   :  { %12 = vsyncpa [#allocation3], 0  ;;  %s1492_s0 = inlined_call_operand.vmem [shape: f32[16,16], index: 0, kind: input, shape index: {}]   ;;  %s1493_s1 = inlined_call_operand.vmem [shape: f32[16,32], index: 1, kind: input, shape index: {}]   ;;  %s1494_s2 = inlined_call_operand.vmem [shape: f32[1,32], index: 2, kind: input, shape index: {}]   ;;  %s1495_s3 = inlined_call_operand.hbm [shape: f32[64,64], index: 3, kind: input, shape index: {}]   ;;  %s1496_s4 = inlined_call_operand.vmem [shape: f32[1,64], index: 4, kind: input, shape index: {}]   ;;  %s1497_s5 = inlined_call_operand.vmem [shape: f32[32,5], index: 5, kind: input, shape index: {}]   ;;  %s1498_s6 = inlined_call_operand.vmem [shape: f32[1,5], index: 6, kind: input, shape index: {}]   ;;  %s1499_s7 = inlined_call_operand.hbm [shape: f32[2,5], index: 7, kind: output, shape index: {}]  }
   0x1   :  { %13 = vsyncpa [#allocation4], 0  ;;  %s1199_s24 = smov [#allocation2]  }
   0x2   :  { %s25_s25 = sshll.u32 %s1199_s24, 4  ;;  %s26_s25 = int_to_ptr.vmem [resolvable:$true] %s25_s25 }
   0x3   :  { %s1163_s26 = scalar_lea.vmem %s26_s25, 1024  ;;  %p1168_p1 = scmp.lt.s32.totalorder %s26_s25, %s26_s25 }
   0x4   :  { %p1164_p0 = scmp.ne.s32.totalorder %s26_s25, %s1163_s26  ;;  %p1169_p2 = scmp.lt.s32.totalorder %s1163_s26, %s1163_s26 }
   0x6   :  { %p1170_p3 = por %p1169_p2, %p1168_p1 }
   0x8   :  { %p1171_p4 = pnand %p1170_p3, %p1164_p0 }
   0xa   :  { %1174 = shalt.err (!%p1171_p4)
}
   0xb   :  { %s1200_s27 = smov 128   ;;  %s1201_s28 = smov 8  }
   0xc   :  { %31 = dma.hbm_to_vmem [thread:$0]  %s1495_s3, 1024, %s26_s25, [#allocation3], %s1200_s27, %s1200_s27, %s1201_s28  }
   0xd   :  { %1195 = dma.done.wait [#allocation3], 1024  }
   0xe   :  { %1196 = vsyncadd [#allocation3], 4294966272  ;;  %v1202_v0 = vmov 0.0   ;;  %vm52_vm0 = vcmask 130048   ;;  %v44_v1 = vld [vmem:[%s1493_s1 + $0x8] sm:$0xff]  ;;  %v43_v2 = vld [vmem:[%s1493_s1] sm:$0xff] }
   0xf   :  { %985 = vmatprep.subr.mxu1 %v1202_v0  ;;  %v41_v3 = vld [vmem:[%s1492_s0] sm:$0xff]  ;;  %978 = vmatprep.subr.mxu0 %v44_v1  ;;  %v1260_v4 = vld [vmem:[#allocation2 + $0x38] sm:$0xff]  ;;  %v1262_v5 = vld [vmem:[#allocation2 + $0x30] sm:$0xff]  ;;  %vm1203_vm1 = vmmov 0   ;;  %vm144_vm2 = vcmask 261120   ;;  %vm152_vm3 = vcmask 523264  }
  0x10   :  { %982 = vmatprep.mubr.msk.f32.mxu0 %vm52_vm0, %v41_v3  ;;  %979 = vmatpush3.msra.mxu0 %v44_v1  ;;  %v42_v6 = vld [vmem:[%s1492_s0 + $0x8] sm:$0xff]  ;;  %v1274_v8 = vld [vmem:[#allocation2 + $0x20] sm:$0xff]  ;;  %v1289_v9 = vld [vmem:[#allocation2 + $0x18] sm:$0xff]  ;;  %s1204_s23 = smov 96   ;;  %s1205_s26 = smov [#allocation5]   ;;  %vm866_vm4 = vcmask 33792  }
  0x11   :  { %986 = vmatpush3.msra.mxu1 %v1260_v4  ;;  %980 = vmatprep.subr.mxu0 %v43_v2  ;;  %v1269_v7 = vld [vmem:[#allocation2 + $0x28] sm:$0xff]  ;;  %v1294_v10 = vld [vmem:[#allocation2 + $0x10] sm:$0xff]  ;;  %v1302_v12 = vld [vmem:[#allocation2] sm:$0xff]  ;;  %s874_s27 = sshll.u32 %s1205_s26, 4  ;;  %s875_s27 = int_to_ptr.vmem [resolvable:$true] %s874_s27 }
  0x12   :  { %987 = vmatprep.subr.mxu1 %v1202_v0  ;;  %981 = vmatpush3.msra.mxu0 %v43_v2  ;;  %v1298_v11 = vld [vmem:[#allocation2 + $0x8] sm:$0xff]  ;;  %v883_v13 = vld [vmem:[%s1494_s2] ss:$0 sm:$0xff]  ;;  %p1180_p6 = scmp.lt.s32.totalorder %s875_s27, %s875_s27 }
  0x13   :  { %988 = vmatpush3.msra.mxu1 %v1262_v5  ;;  %983 = vmatmul.mubr.msk.f32.vlgmr.msra.gmra.mxu0 %vm52_vm0, %v42_v6  ;;  %v1348_v20 = vld [vmem:[%s1496_s4] ss:$0 sm:$0xff] }
  0x14   :  { %989 = vmatprep.subr.mxu1 %v1202_v0  ;;  %1004 = vmatprep.subr.mxu0 %v1202_v0 }
  0x15   :  { %990 = vmatpush3.msra.mxu1 %v1269_v7  ;;  %1005 = vmatpush3.msra.mxu0 %v1260_v4 }
  0x16   :  { %991 = vmatprep.subr.mxu1 %v1202_v0  ;;  %1006 = vmatprep.subr.mxu0 %v1202_v0 }
  0x17   :  { %992 = vmatpush3.msra.mxu1 %v1274_v8  ;;  %1007 = vmatpush3.msra.mxu0 %v1262_v5 }
  0x18   :  { %993 = vmatprep.subr.mxu1 %v1202_v0  ;;  %1008 = vmatprep.subr.mxu0 %v1202_v0 }
  0x19   :  { %1009 = vmatpush3.msra.mxu0 %v1269_v7  ;;  %994 = vmatpush3.msra.mxu1 %v1289_v9 }
  0x1a   :  { %1010 = vmatprep.subr.mxu0 %v1202_v0  ;;  %995 = vmatprep.subr.mxu1 %v1202_v0 }
  0x1b   :  { %1011 = vmatpush3.msra.mxu0 %v1274_v8  ;;  %996 = vmatpush3.msra.mxu1 %v1294_v10 }
  0x1c   :  { %1012 = vmatprep.subr.mxu0 %v1202_v0  ;;  %997 = vmatprep.subr.mxu1 %v1202_v0 }
  0x1d   :  { %1013 = vmatpush3.msra.mxu0 %v1289_v9  ;;  %1001 = vmatprep.mubr.msk.f32.mxu1 %vm1203_vm1, %v1202_v0 }
  0x1e   :  { %1014 = vmatprep.subr.mxu0 %v1202_v0  ;;  %998 = vmatpush3.msra.mxu1 %v1298_v11 }
  0x1f   :  { %1015 = vmatpush3.msra.mxu0 %v1294_v10  ;;  %999 = vmatprep.subr.mxu1 %v1202_v0 }
  0x20   :  { %1016 = vmatprep.subr.mxu0 %v1202_v0  ;;  %1000 = vmatpush3.msra.mxu1 %v1302_v12 }
  0x21   :  { %1017 = vmatpush3.msra.mxu0 %v1298_v11  ;;  %1020 = vmatprep.mubr.msk.f32.mxu0 %vm1203_vm1, %v1202_v0 }
  0x22   :  { %1018 = vmatprep.subr.mxu0 %v1202_v0  ;;  %1023 = vmatprep.subr.mxu1 %v1202_v0 }
  0x23   :  { %1019 = vmatpush3.msra.mxu0 %v1302_v12 }
  0x24   :  { %1042 = vmatprep.subr.mxu0 %v1202_v0 }
  0xd3   :  { %v984_v14 = vpop.f32.mrf.mxu0 }
  0xd4   :  { %v1320_v15 = vadd.f32 %v984_v14, %v883_v13  ;;  %v782_v14 = vld [vmem:[%s1497_s5 + $0x10] sm:$0xff] }
  0xd5   :  { %v125_v16 = vpop.f32.mrf.mxu0 }
  0xd6   :  { %v1322_v17 = vadd.f32 %v883_v13, %v125_v16  ;;  %v542_v54 = vrot.slane %v1320_v15, 2  ;;  %v621_v62 = vrot.slane %v1320_v15, 4  ;;  %v783_v13 = vld [vmem:[%s1497_s5 + $0x18] sm:$0xff]  ;;  %v780_v16 = vld [vmem:[%s1497_s5] sm:$0xff] }
  0xd8   :  { %v143_v18 = vmax.f32 %v1322_v17, 0.0  ;;  %v227_v23 = vrot.slane %v1322_v17, 2  ;;  %v306_v31 = vrot.slane %v1322_v17, 4  ;;  %v385_v39 = vrot.slane %v1322_v17, 6 }
  0xda   :  { %v145_v19 = vsel %vm144_vm2, %v143_v18, 0.0 }
  0xdb   :  { %1002 = vmatmul.mubr.msk.f32.vlgmr.msra.gmra.mxu1 %vm152_vm3, %v145_v19 }
  0xdc   :  { %1024 = vmatpush3.msra.mxu1 %v1260_v4  ;;  %1039 = vmatprep.mubr.msk.f32.mxu1 %vm1203_vm1, %v1202_v0 }
  0xdd   :  { %1025 = vmatprep.subr.mxu1 %v1202_v0 }
  0xde   :  { %1026 = vmatpush3.msra.mxu1 %v1262_v5 }
  0xdf   :  { %1027 = vmatprep.subr.mxu1 %v1202_v0 }
  0xe0   :  { %1028 = vmatpush3.msra.mxu1 %v1269_v7 }
  0xe1   :  { %1029 = vmatprep.subr.mxu1 %v1202_v0 }
  0xe2   :  { %1030 = vmatpush3.msra.mxu1 %v1274_v8 }
  0xe3   :  { %1031 = vmatprep.subr.mxu1 %v1202_v0 }
  0xe4   :  { %1032 = vmatpush3.msra.mxu1 %v1289_v9 }
  0xe5   :  { %1033 = vmatprep.subr.mxu1 %v1202_v0 }
  0xe6   :  { %1034 = vmatpush3.msra.mxu1 %v1294_v10 }
  0xe7   :  { %1035 = vmatprep.subr.mxu1 %v1202_v0 }
  0xe8   :  { %1036 = vmatpush3.msra.mxu1 %v1298_v11 }
  0xe9   :  { %1037 = vmatprep.subr.mxu1 %v1202_v0 }
  0xea   :  { %1038 = vmatpush3.msra.mxu1 %v1302_v12 }
  0xeb   :  { %1061 = vmatprep.subr.mxu1 %v1202_v0 }
 0x19b   :  { %v222_v21 = vpop.f32.mrf.mxu1 }
 0x19c   :  { %v223_v22 = vadd.f32 %v1348_v20, %v222_v21 }
 0x19d   :  { %v1003_v24 = vpop.f32.mrf.mxu1 }
 0x19e   :  { %v229_v25 = vadd.f32 %v227_v23, %v223_v22  ;;  %v231_v27 = vmax.f32 %v223_v22, 0.0  ;;  %v895_v23 = vld [vmem:[%s1498_s6] ss:$0 sm:$0xff] }
 0x1a0   :  { %v230_v26 = vmax.f32 %v229_v25, 0.0 }
 0x1a2   :  { %v232_v28 = vsel %vm144_vm2, %v230_v26, %v231_v27 }
 0x1a3   :  { %1021 = vmatmul.mubr.msk.f32.vlgmr.msra.gmra.mxu0 %vm152_vm3, %v232_v28 }
 0x1a4   :  { %1043 = vmatpush3.msra.mxu0 %v1260_v4  ;;  %1058 = vmatprep.mubr.msk.f32.mxu0 %vm1203_vm1, %v1202_v0 }
 0x1a5   :  { %1044 = vmatprep.subr.mxu0 %v1202_v0 }
 0x1a6   :  { %1045 = vmatpush3.msra.mxu0 %v1262_v5 }
 0x1a7   :  { %1046 = vmatprep.subr.mxu0 %v1202_v0 }
 0x1a8   :  { %1047 = vmatpush3.msra.mxu0 %v1269_v7 }
 0x1a9   :  { %1048 = vmatprep.subr.mxu0 %v1202_v0 }
 0x1aa   :  { %1049 = vmatpush3.msra.mxu0 %v1274_v8 }
 0x1ab   :  { %1050 = vmatprep.subr.mxu0 %v1202_v0 }
 0x1ac   :  { %1051 = vmatpush3.msra.mxu0 %v1289_v9 }
 0x1ad   :  { %1052 = vmatprep.subr.mxu0 %v1202_v0 }
 0x1ae   :  { %1053 = vmatpush3.msra.mxu0 %v1294_v10 }
 0x1af   :  { %1054 = vmatprep.subr.mxu0 %v1202_v0 }
 0x1b0   :  { %1055 = vmatpush3.msra.mxu0 %v1298_v11 }
 0x1b1   :  { %1056 = vmatprep.subr.mxu0 %v1202_v0 }
 0x1b2   :  { %1057 = vmatpush3.msra.mxu0 %v1302_v12 }
 0x1b3   :  { %1080 = vmatprep.subr.mxu0 %v1202_v0 }
 0x263   :  { %v302_v29 = vpop.f32.mrf.mxu0 }
 0x264   :  { %v303_v30 = vadd.f32 %v1348_v20, %v302_v29 }
 0x265   :  { %v1022_v32 = vpop.f32.mrf.mxu0 }
 0x266   :  { %v308_v33 = vadd.f32 %v306_v31, %v303_v30  ;;  %v310_v35 = vmax.f32 %v303_v30, 0.0 }
 0x268   :  { %v309_v34 = vmax.f32 %v308_v33, 0.0 }
 0x26a   :  { %v311_v36 = vsel %vm144_vm2, %v309_v34, %v310_v35 }
 0x26b   :  { %1040 = vmatmul.mubr.msk.f32.vlgmr.msra.gmra.mxu1 %vm152_vm3, %v311_v36 }
 0x26c   :  { %1062 = vmatpush3.msra.mxu1 %v1260_v4  ;;  %1077 = vmatprep.mubr.msk.f32.mxu1 %vm1203_vm1, %v1202_v0 }
 0x26d   :  { %1063 = vmatprep.subr.mxu1 %v1202_v0 }
 0x26e   :  { %1064 = vmatpush3.msra.mxu1 %v1262_v5 }
 0x26f   :  { %1065 = vmatprep.subr.mxu1 %v1202_v0 }
 0x270   :  { %1066 = vmatpush3.msra.mxu1 %v1269_v7 }
 0x271   :  { %1067 = vmatprep.subr.mxu1 %v1202_v0 }
 0x272   :  { %1068 = vmatpush3.msra.mxu1 %v1274_v8 }
 0x273   :  { %1069 = vmatprep.subr.mxu1 %v1202_v0 }
 0x274   :  { %1070 = vmatpush3.msra.mxu1 %v1289_v9 }
 0x275   :  { %1071 = vmatprep.subr.mxu1 %v1202_v0 }
 0x276   :  { %1072 = vmatpush3.msra.mxu1 %v1294_v10 }
 0x277   :  { %1073 = vmatprep.subr.mxu1 %v1202_v0 }
 0x278   :  { %1074 = vmatpush3.msra.mxu1 %v1298_v11 }
 0x279   :  { %1075 = vmatprep.subr.mxu1 %v1202_v0 }
 0x27a   :  { %1076 = vmatpush3.msra.mxu1 %v1302_v12 }
 0x27b   :  { %1099 = vmatprep.subr.mxu1 %v1202_v0 }
 0x32b   :  { %v381_v37 = vpop.f32.mrf.mxu1 }
 0x32c   :  { %v382_v38 = vadd.f32 %v1348_v20, %v381_v37 }
 0x32d   :  { %v1041_v40 = vpop.f32.mrf.mxu1 }
 0x32e   :  { %v387_v41 = vadd.f32 %v385_v39, %v382_v38  ;;  %v389_v43 = vmax.f32 %v382_v38, 0.0 }
 0x330   :  { %v388_v42 = vmax.f32 %v387_v41, 0.0 }
 0x332   :  { %v390_v44 = vsel %vm144_vm2, %v388_v42, %v389_v43 }
 0x333   :  { %1059 = vmatmul.mubr.msk.f32.vlgmr.msra.gmra.mxu0 %vm152_vm3, %v390_v44 }
 0x334   :  { %1081 = vmatpush3.msra.mxu0 %v1260_v4  ;;  %1096 = vmatprep.mubr.msk.f32.mxu0 %vm1203_vm1, %v1202_v0 }
 0x335   :  { %1082 = vmatprep.subr.mxu0 %v1202_v0 }
 0x336   :  { %1083 = vmatpush3.msra.mxu0 %v1262_v5 }
 0x337   :  { %1084 = vmatprep.subr.mxu0 %v1202_v0 }
 0x338   :  { %1085 = vmatpush3.msra.mxu0 %v1269_v7 }
 0x339   :  { %1086 = vmatprep.subr.mxu0 %v1202_v0 }
 0x33a   :  { %1087 = vmatpush3.msra.mxu0 %v1274_v8 }
 0x33b   :  { %1088 = vmatprep.subr.mxu0 %v1202_v0 }
 0x33c   :  { %1089 = vmatpush3.msra.mxu0 %v1289_v9 }
 0x33d   :  { %1090 = vmatprep.subr.mxu0 %v1202_v0 }
 0x33e   :  { %1091 = vmatpush3.msra.mxu0 %v1294_v10 }
 0x33f   :  { %1092 = vmatprep.subr.mxu0 %v1202_v0 }
 0x340   :  { %1093 = vmatpush3.msra.mxu0 %v1298_v11 }
 0x341   :  { %1094 = vmatprep.subr.mxu0 %v1202_v0 }
 0x342   :  { %1095 = vmatpush3.msra.mxu0 %v1302_v12 }
 0x343   :  { %1118 = vmatprep.subr.mxu0 %v1202_v0 }
 0x3f3   :  { %v460_v45 = vpop.f32.mrf.mxu0 }
 0x3f4   :  { %v461_v46 = vadd.f32 %v1348_v20, %v460_v45 }
 0x3f5   :  { %v1060_v47 = vpop.f32.mrf.mxu0 }
 0x3f6   :  { %v464_v48 = vadd.f32 %v461_v46, %v1320_v15  ;;  %v466_v50 = vmax.f32 %v461_v46, 0.0 }
 0x3f8   :  { %v465_v49 = vmax.f32 %v464_v48, 0.0 }
 0x3fa   :  { %v467_v51 = vsel %vm144_vm2, %v465_v49, %v466_v50 }
 0x3fb   :  { %1078 = vmatmul.mubr.msk.f32.vlgmr.msra.gmra.mxu1 %vm152_vm3, %v467_v51 }
 0x3fc   :  { %1100 = vmatpush3.msra.mxu1 %v1260_v4  ;;  %1115 = vmatprep.mubr.msk.f32.mxu1 %vm1203_vm1, %v1202_v0 }
 0x3fd   :  { %1101 = vmatprep.subr.mxu1 %v1202_v0 }
 0x3fe   :  { %1102 = vmatpush3.msra.mxu1 %v1262_v5 }
 0x3ff   :  { %1103 = vmatprep.subr.mxu1 %v1202_v0 }
 0x400   :  { %1104 = vmatpush3.msra.mxu1 %v1269_v7 }
 0x401   :  { %1105 = vmatprep.subr.mxu1 %v1202_v0 }
 0x402   :  { %1106 = vmatpush3.msra.mxu1 %v1274_v8 }
 0x403   :  { %1107 = vmatprep.subr.mxu1 %v1202_v0 }
 0x404   :  { %1108 = vmatpush3.msra.mxu1 %v1289_v9 }
 0x405   :  { %1109 = vmatprep.subr.mxu1 %v1202_v0 }
 0x406   :  { %1110 = vmatpush3.msra.mxu1 %v1294_v10 }
 0x407   :  { %1111 = vmatprep.subr.mxu1 %v1202_v0 }
 0x408   :  { %1112 = vmatpush3.msra.mxu1 %v1298_v11 }
 0x409   :  { %1113 = vmatprep.subr.mxu1 %v1202_v0 }
 0x40a   :  { %1114 = vmatpush3.msra.mxu1 %v1302_v12 }
 0x40b   :  { %1137 = vmatprep.subr.mxu1 %v1202_v0 }
 0x4bb   :  { %v537_v52 = vpop.f32.mrf.mxu1 }
 0x4bc   :  { %v538_v53 = vadd.f32 %v1348_v20, %v537_v52 }
 0x4bd   :  { %v1079_v55 = vpop.f32.mrf.mxu1 }
 0x4be   :  { %v544_v56 = vadd.f32 %v542_v54, %v538_v53  ;;  %v546_v58 = vmax.f32 %v538_v53, 0.0 }
 0x4c0   :  { %v545_v57 = vmax.f32 %v544_v56, 0.0 }
 0x4c2   :  { %v547_v59 = vsel %vm144_vm2, %v545_v57, %v546_v58 }
 0x4c3   :  { %1097 = vmatmul.mubr.msk.f32.vlgmr.msra.gmra.mxu0 %vm152_vm3, %v547_v59 }
 0x4c4   :  { %1119 = vmatpush3.msra.mxu0 %v1260_v4  ;;  %1134 = vmatprep.mubr.msk.f32.mxu0 %vm1203_vm1, %v1202_v0 }
 0x4c5   :  { %1120 = vmatprep.subr.mxu0 %v1202_v0 }
 0x4c6   :  { %1121 = vmatpush3.msra.mxu0 %v1262_v5 }
 0x4c7   :  { %1122 = vmatprep.subr.mxu0 %v1202_v0 }
 0x4c8   :  { %1123 = vmatpush3.msra.mxu0 %v1269_v7  ;;  %v700_v7 = vrot.slane %v1320_v15, 6  ;;  %v781_v15 = vld [vmem:[%s1497_s5 + $0x8] sm:$0xff]  ;;  %s1175_s5 = scalar_lea.vmem %s875_s27, 32 }
 0x4c9   :  { %1124 = vmatprep.subr.mxu0 %v1202_v0  ;;  %p1176_p5 = scmp.ne.s32.totalorder %s875_s27, %s1175_s5  ;;  %p1181_p7 = scmp.lt.s32.totalorder %s1175_s5, %s1175_s5 }
 0x4ca   :  { %1125 = vmatpush3.msra.mxu0 %v1274_v8 }
 0x4cb   :  { %1126 = vmatprep.subr.mxu0 %v1202_v0  ;;  %p1182_p8 = por %p1181_p7, %p1180_p6 }
 0x4cc   :  { %1127 = vmatpush3.msra.mxu0 %v1289_v9 }
 0x4cd   :  { %1128 = vmatprep.subr.mxu0 %v1202_v0  ;;  %p1183_p9 = pnand %p1182_p8, %p1176_p5 }
 0x4ce   :  { %1129 = vmatpush3.msra.mxu0 %v1294_v10 }
 0x4cf   :  { %1130 = vmatprep.subr.mxu0 %v1202_v0 }
 0x4d0   :  { %1131 = vmatpush3.msra.mxu0 %v1298_v11 }
 0x4d1   :  { %1132 = vmatprep.subr.mxu0 %v1202_v0 }
 0x4d2   :  { %1133 = vmatpush3.msra.mxu0 %v1302_v12 }
 0x583   :  { %v617_v60 = vpop.f32.mrf.mxu0 }
 0x584   :  { %v618_v61 = vadd.f32 %v1348_v20, %v617_v60 }
 0x585   :  { %v1098_v63 = vpop.f32.mrf.mxu0 }
 0x586   :  { %v623_v1 = vadd.f32 %v621_v62, %v618_v61  ;;  %v625_v3 = vmax.f32 %v618_v61, 0.0 }
 0x588   :  { %v624_v2 = vmax.f32 %v623_v1, 0.0 }
 0x58a   :  { %v626_v4 = vsel %vm144_vm2, %v624_v2, %v625_v3 }
 0x58b   :  { %1116 = vmatmul.mubr.msk.f32.vlgmr.msra.gmra.mxu1 %vm152_vm3, %v626_v4 }
 0x58c   :  { %1145 = vmatprep.mubr.msk.f32.mxu1 %vm1203_vm1, %v1202_v0  ;;  %1138 = vmatpush3.msra.mxu1 %v783_v13 }
 0x58d   :  { %1139 = vmatprep.subr.mxu1 %v1202_v0 }
 0x58e   :  { %1140 = vmatpush3.msra.mxu1 %v782_v14 }
 0x58f   :  { %1141 = vmatprep.subr.mxu1 %v1202_v0 }
 0x590   :  { %1142 = vmatpush3.msra.mxu1 %v781_v15 }
 0x591   :  { %1143 = vmatprep.subr.mxu1 %v1202_v0 }
 0x592   :  { %1144 = vmatpush3.msra.mxu1 %v780_v16 }
 0x64b   :  { %v696_v5 = vpop.f32.mrf.mxu1 }
 0x64c   :  { %v697_v6 = vadd.f32 %v1348_v20, %v696_v5 }
 0x64d   :  { %v1117_v8 = vpop.f32.mrf.mxu1 }
 0x64e   :  { %v702_v9 = vadd.f32 %v700_v7, %v697_v6  ;;  %v704_v11 = vmax.f32 %v697_v6, 0.0 }
 0x650   :  { %v703_v10 = vmax.f32 %v702_v9, 0.0 }
 0x652   :  { %v705_v12 = vsel %vm144_vm2, %v703_v10, %v704_v11 }
 0x653   :  { %1135 = vmatmul.mubr.msk.f32.vlgmr.msra.gmra.mxu0 %vm152_vm3, %v705_v12 }
 0x713   :  { %v775_v17 = vpop.f32.mrf.mxu0 }
 0x714   :  { %v776_v18 = vadd.f32 %v1348_v20, %v775_v17 }
 0x715   :  { %v1136_v19 = vpop.f32.mrf.mxu0 }
 0x716   :  { %v779_v21 = vmax.f32 %v776_v18, 0.0 }
 0x718   :  { %792 = vrot.lane.b32.xlu0 %v779_v21, %s1204_s23 }
 0x78a   :  { %v793_v22 = vpop.permute.xlu0 %792 }
 0x78b   :  { %1146 = vmatmul.mubr.msk.f32.vlgmr.msra.gmra.mxu1 %vm144_vm2, %v793_v22 }
 0x84b   :  { %v862_v0 = vpop.f32.mrf.mxu1 }
 0x84c   :  { %v863_v24 = vadd.f32 %v895_v23, %v862_v0 }
 0x84d   :  { %v1147_v25 = vpop.f32.mrf.mxu1 }
 0x84e   :  { %867 = vst.msk [vmem:[#allocation5] sm:$0x3] %vm866_vm4, %v863_v24 }
 0x84f   :  { %1186 = shalt.err (!%p1183_p9)
}
 0x850   :  { %877 = dma.vmem_to_hbm [thread:$0]  %s875_s27, 32, %s1499_s7, [#allocation4]  }
 0x851   :  { %1197 = dma.done.wait [#allocation4], 32  }
 0x852   :  { %1198 = vsyncadd [#allocation4], 4294967264 }
 0x853   :  { %881 = vsyncpa [#allocation3], 1 }
 0x854   :  { %882 = vsyncpa [#allocation4], 1 }

</bundles_post_ra>
